<compile_context>
chip_gen: v5e
topology: v5e:2x2
jax: 0.10.0
libtpu: 0.0.40
codegen_flags: <defaults>
</compile_context>

<pallas_src>
import functools

import jax
import jax.numpy as jnp
from jax import lax
from jax.experimental import pallas as pl
from jax.experimental.pallas import tpu as pltpu


def _conv1d_block_kernel(x_ref, w_ref, m_ref, p_ref, o_ref, slab_ref,
                         *, kernel_size, stride, eps):
    # x_ref:    (C_in_p, L_pad)    causally left-padded input (channels padded to x8)
    # w_ref:    (C_out, K*C_in_p)  conv weight, taps folded into the contraction dim
    # m_ref:    (C_out, C_out)     group-average matrix: 1/(group_size*L_out) in-group
    # p_ref:    (3, C_out, 1)      [conv bias, gn gamma, gn beta]
    # o_ref:    (C_out, L_out)     output tile (one batch element)
    # slab_ref: (K*C_in_p, L_out)  VMEM scratch holding the K shifted tap slices
    c_in_p = x_ref.shape[0]
    c_out, l_out = o_ref.shape
    span = (l_out - 1) * stride + 1

    # ---- pack the K shifted (strided) taps into the contraction slab ----
    # Reads come straight from the ref in the native dtype (bf16/f32) -- no f32 copy.
    for k in range(kernel_size):
        xk = x_ref[:, pl.ds(k, span)]                         # (C_in_p, span), static slice
        if stride > 1:
            xk = lax.slice(xk, (0, 0), (c_in_p, span), (1, stride))  # (C_in_p, L_out)
        slab_ref[pl.ds(k * c_in_p, c_in_p), :] = xk           # sublane-aligned store

    # ---- causal Conv1d as a single MXU matmul with f32 accumulation ----
    acc = jnp.dot(w_ref[...], slab_ref[...],
                  preferred_element_type=jnp.float32)          # (C_out, L_out)
    acc = acc + p_ref[0].astype(jnp.float32)                   # conv bias, bcast over time

    # ---- GroupNorm: two-pass (mean, then centered sum of squares) ----
    sum_c = jnp.sum(acc, axis=1, keepdims=True)                # (C_out, 1) per-channel sum
    mean_c = jnp.dot(m_ref[...], sum_c,
                     preferred_element_type=jnp.float32)       # group mean per channel
    centered = acc - mean_c
    ssq_c = jnp.sum(centered * centered, axis=1, keepdims=True)
    var_c = jnp.dot(m_ref[...], ssq_c,
                    preferred_element_type=jnp.float32)        # biased group variance
    rstd_c = lax.rsqrt(var_c + eps)
    y = centered * rstd_c
    y = y * p_ref[1].astype(jnp.float32) + p_ref[2].astype(jnp.float32)

    # ---- Mish with one exp:  y * u/(u+2),  u = t*(t+2),  t = exp(min(y, 20)) ----
    t = jnp.exp(jnp.minimum(y, 20.0))
    u = t * (t + 2.0)
    o_ref[...] = (y * (u / (u + 2.0))).astype(o_ref.dtype)


def conv1d_block_forward(x, w, b, gamma, beta, *, kernel_size, stride,
                         n_groups=8, eps=1e-5):
    """Fused CausalConv1d -> GroupNorm -> Mish.

    x: (B, C_in, L) NCL (PyTorch layout), w: (C_out, C_in, K).
    Returns (B, C_out, L_out) NCL.
    """
    B, C_in, L = x.shape
    C_out, _, K = w.shape
    assert K == kernel_size
    if C_out % n_groups != 0:
        raise ValueError("out_channels must be divisible by n_groups")

    pad = K - 1                                        # dilation=1 causal padding
    L_conv = (L + 2 * pad - (K - 1) - 1) // stride + 1
    last_n = (2 * pad - K) // stride + 1
    L_out = L_conv - last_n if last_n > 0 else L_conv

    # Left-pad only (the causally trimmed outputs never read the right padding) and
    # round the channel dim up to a sublane multiple so the tap packing is aligned.
    C_in_p = ((C_in + 7) // 8) * 8
    x_pad = jnp.pad(x, ((0, 0), (0, C_in_p - C_in), (pad, 0)))
    L_pad = L + pad

    # Weight with taps folded into the contraction dim: w_cat[o, k*C_in_p + i] = w[o, i, k].
    w_cat = jnp.transpose(w, (0, 2, 1))                               # (C_out, K, C_in)
    w_cat = jnp.pad(w_cat, ((0, 0), (0, 0), (0, C_in_p - C_in)))
    w_cat = w_cat.reshape(C_out, K * C_in_p).astype(x.dtype)

    # Per-channel params merged into one constant-index input: [bias, gamma, beta].
    params = jnp.stack([b, gamma, beta]).reshape(3, C_out, 1).astype(jnp.float32)

    # Group-average matrix (hoisted out of the kernel; constant across grid steps):
    # M[c, c'] = 1/(group_size * L_out) if c and c' are in the same group else 0.
    gsz = C_out // n_groups
    gid = jnp.arange(C_out) // gsz
    m_mat = (gid[:, None] == gid[None, :]).astype(jnp.float32) / float(gsz * L_out)

    # Generation-aware VMEM budget (v5e/v6e: 128 MiB physical, v7x: 64 MiB).
    try:
        vmem_cap = pltpu.get_tpu_info().vmem_capacity_bytes
        vmem_limit = min((vmem_cap * 3) // 4, 100 * 1024 * 1024)
    except Exception:  # conservative fallback that fits every generation
        vmem_limit = 48 * 1024 * 1024

    kernel = functools.partial(_conv1d_block_kernel, kernel_size=K, stride=stride,
                               eps=eps)

    # TODO(synk): for very long L add an L-tiling grid axis with a two-pass GroupNorm
    # (accumulate group sum/sumsq across L-chunks, finalize in a second sweep) so the
    # per-step tile stays within v7x's 64 MiB VMEM and feeds both TensorCores.
    out = pl.pallas_call(
        kernel,
        out_shape=jax.ShapeDtypeStruct((B, C_out, L_out), x.dtype),
        grid_spec=pltpu.PrefetchScalarGridSpec(
            num_scalar_prefetch=0,
            grid=(B,),
            in_specs=[
                pl.BlockSpec((None, C_in_p, L_pad), lambda bi: (bi, 0, 0)),
                pl.BlockSpec((C_out, K * C_in_p), lambda bi: (0, 0)),
                pl.BlockSpec((C_out, C_out), lambda bi: (0, 0)),
                pl.BlockSpec((3, C_out, 1), lambda bi: (0, 0, 0)),
            ],
            out_specs=pl.BlockSpec((None, C_out, L_out), lambda bi: (bi, 0, 0)),
            scratch_shapes=[pltpu.VMEM((K * C_in_p, L_out), x.dtype)],
        ),
        compiler_params=pltpu.CompilerParams(
            dimension_semantics=("parallel",),
            vmem_limit_bytes=int(vmem_limit),
        ),
    )(x_pad, w_cat, m_mat, params)
    return out


def _reference(x, w, b, gamma, beta, *, kernel_size, stride, n_groups, eps=1e-5):
    """Pure-JAX reference matching the PyTorch Conv1dBlock forward."""
    B, C_in, L = x.shape
    C_out, _, K = w.shape
    pad = K - 1
    xp = jnp.pad(x, ((0, 0), (0, 0), (pad, pad)))
    L_conv = (L + 2 * pad - K) // stride + 1
    acc = jnp.zeros((B, C_out, L_conv), jnp.float32)
    for k in range(K):
        xs = xp[:, :, k: k + (L_conv - 1) * stride + 1: stride]
        acc = acc + jnp.einsum('oi,bil->bol', w[:, :, k], xs,
                               precision=lax.Precision.HIGHEST)
    conv = acc + b[None, :, None]
    last_n = (2 * pad - K) // stride + 1
    if last_n > 0:
        conv = conv[:, :, :-last_n]
    Bc, C, T = conv.shape
    g = conv.reshape(Bc, n_groups, C // n_groups, T)
    mean = g.mean(axis=(2, 3), keepdims=True)
    var = ((g - mean) ** 2).mean(axis=(2, 3), keepdims=True)
    y = ((g - mean) * lax.rsqrt(var + eps)).reshape(Bc, C, T)
    y = y * gamma[None, :, None] + beta[None, :, None]
    return y * jnp.tanh(jax.nn.softplus(y))


if __name__ == "__main__":
    # Shapes consistent with Conv1dBlock(inp_channels=4, out_channels=16,
    # kernel_size=3, stride=1, n_groups=8, causal=True).
    B, C_in, C_out, K, stride, L, n_groups = 2, 4, 16, 3, 1, 16, 8

    key = jax.random.PRNGKey(0)
    kx, kw, kb = jax.random.split(key, 3)
    x = jax.random.normal(kx, (B, C_in, L), dtype=jnp.float32)

    # Deterministic PyTorch-style init for the conv; GroupNorm default affine init.
    bound = 1.0 / (C_in * K) ** 0.5
    w = jax.random.uniform(kw, (C_out, C_in, K), jnp.float32, -bound, bound)
    b = jax.random.uniform(kb, (C_out,), jnp.float32, -bound, bound)
    gamma = jnp.ones((C_out,), jnp.float32)
    beta = jnp.zeros((C_out,), jnp.float32)

    y = conv1d_block_forward(x, w, b, gamma, beta,
                             kernel_size=K, stride=stride, n_groups=n_groups)
    jax.block_until_ready(y)
    assert y.shape == (B, C_out, L)

    # Correctness check (loose tolerance: in-kernel f32 MXU matmul pass decomposition
    # may differ slightly from the HIGHEST-precision XLA reference).
    y_ref = _reference(x, w, b, gamma, beta,
                       kernel_size=K, stride=stride, n_groups=n_groups)
    assert jnp.allclose(y, y_ref, atol=2e-2, rtol=2e-2), \
        float(jnp.max(jnp.abs(y - y_ref)))

    print("KERNEL_OK")
</pallas_src>

<mosaic_0001>
module attributes {stable_mosaic.version = 11 : i64} {
  func.func @_conv1d_block_kernel(%arg0: i32, %arg1: memref<1x8x18xf32, #tpu.memory_space<vmem>>, %arg2: memref<16x24xf32, #tpu.memory_space<vmem>>, %arg3: memref<16x16xf32, #tpu.memory_space<vmem>>, %arg4: memref<3x16x1xf32, #tpu.memory_space<vmem>>, %arg5: memref<1x16x16xf32, #tpu.memory_space<vmem>>, %arg6: memref<24x16xf32, #tpu.memory_space<vmem>>) attributes {dimension_semantics = [#tpu.dimension_semantics<parallel>], iteration_bounds = array<i64: 2>, scalar_prefetch = 0 : i64, scratch_operands = 1 : i64, tpu.core_type = #tpu.core_type<tc>, window_params = [{transform_indices = @transform_0, window_bounds = array<i64: 1, 8, 18>}, {pipeline_mode = #tpu.pipeline_mode<synchronous>, transform_indices = @transform_1, window_bounds = array<i64: 16, 24>}, {pipeline_mode = #tpu.pipeline_mode<synchronous>, transform_indices = @transform_2, window_bounds = array<i64: 16, 16>}, {pipeline_mode = #tpu.pipeline_mode<synchronous>, transform_indices = @transform_3, window_bounds = array<i64: 3, 16, 1>}, {transform_indices = @transform_4, window_bounds = array<i64: 1, 16, 16>}]} {
    %c0 = arith.constant 0 : index
    %c0_0 = arith.constant 0 : index
    %c0_1 = arith.constant 0 : index
    %0 = vector.load %arg1[%c0, %c0_0, %c0_1] : memref<1x8x18xf32, #tpu.memory_space<vmem>>, vector<1x8x16xf32>
    %1 = vector.shape_cast %0 : vector<1x8x16xf32> to vector<8x16xf32>
    %c0_2 = arith.constant 0 : index
    %c0_3 = arith.constant 0 : index
    %2 = vector.load %arg6[%c0_2, %c0_3] : memref<24x16xf32, #tpu.memory_space<vmem>>, vector<8x16xf32>
    tpu.vector_store %arg6[%c0_2, %c0_3], %1 {strides = array<i32>} : memref<24x16xf32, #tpu.memory_space<vmem>>, vector<8x16xf32>,
    %c0_4 = arith.constant 0 : index
    %c0_5 = arith.constant 0 : index
    %c1 = arith.constant 1 : index
    %3 = vector.load %arg1[%c0_4, %c0_5, %c1] : memref<1x8x18xf32, #tpu.memory_space<vmem>>, vector<1x8x16xf32>
    %4 = vector.shape_cast %3 : vector<1x8x16xf32> to vector<8x16xf32>
    %c8 = arith.constant 8 : index
    %c0_6 = arith.constant 0 : index
    %5 = vector.load %arg6[%c8, %c0_6] : memref<24x16xf32, #tpu.memory_space<vmem>>, vector<8x16xf32>
    tpu.vector_store %arg6[%c8, %c0_6], %4 {strides = array<i32>} : memref<24x16xf32, #tpu.memory_space<vmem>>, vector<8x16xf32>,
    %c0_7 = arith.constant 0 : index
    %c0_8 = arith.constant 0 : index
    %c2 = arith.constant 2 : index
    %6 = vector.load %arg1[%c0_7, %c0_8, %c2] : memref<1x8x18xf32, #tpu.memory_space<vmem>>, vector<1x8x16xf32>
    %7 = vector.shape_cast %6 : vector<1x8x16xf32> to vector<8x16xf32>
    %c16 = arith.constant 16 : index
    %c0_9 = arith.constant 0 : index
    %8 = vector.load %arg6[%c16, %c0_9] : memref<24x16xf32, #tpu.memory_space<vmem>>, vector<8x16xf32>
    tpu.vector_store %arg6[%c16, %c0_9], %7 {strides = array<i32>} : memref<24x16xf32, #tpu.memory_space<vmem>>, vector<8x16xf32>,
    %c0_10 = arith.constant 0 : index
    %c0_11 = arith.constant 0 : index
    %9 = vector.load %arg2[%c0_10, %c0_11] : memref<16x24xf32, #tpu.memory_space<vmem>>, vector<16x24xf32>
    %c0_12 = arith.constant 0 : index
    %c0_13 = arith.constant 0 : index
    %10 = vector.load %arg6[%c0_12, %c0_13] : memref<24x16xf32, #tpu.memory_space<vmem>>, vector<24x16xf32>
    %cst = arith.constant dense<0.000000e+00> : vector<16x16xf32>
    %11 = tpu.matmul %9, %10, %cst {dimension_numbers = #tpu.dot_dimension_numbers<[1], [0], [0], [1], [0, 0, 1, 1], [], []>} : vector<16x24xf32>, vector<24x16xf32>, vector<16x16xf32> -> vector<16x16xf32>
    %c0_14 = arith.constant 0 : index
    %c0_15 = arith.constant 0 : index
    %c0_16 = arith.constant 0 : index
    %12 = vector.load %arg4[%c0_14, %c0_15, %c0_16] : memref<3x16x1xf32, #tpu.memory_space<vmem>>, vector<1x16x1xf32>
    %13 = vector.shape_cast %12 : vector<1x16x1xf32> to vector<16x1xf32>
    %14 = vector.broadcast %13 : vector<16x1xf32> to vector<16x16xf32>
    %15 = arith.addf %11, %14 : vector<16x16xf32>
    %cst_17 = arith.constant dense<0.000000e+00> : vector<16xf32>
    %16 = vector.multi_reduction <add>, %15, %cst_17 [1] : vector<16x16xf32> to vector<16xf32>
    %17 = vector.shape_cast %16 : vector<16xf32> to vector<16x1xf32>
    %c0_18 = arith.constant 0 : index
    %c0_19 = arith.constant 0 : index
    %18 = vector.load %arg3[%c0_18, %c0_19] : memref<16x16xf32, #tpu.memory_space<vmem>>, vector<16x16xf32>
    %cst_20 = arith.constant dense<0.000000e+00> : vector<16x1xf32>
    %19 = tpu.matmul %18, %17, %cst_20 {dimension_numbers = #tpu.dot_dimension_numbers<[1], [0], [0], [1], [0, 0, 1, 1], [], []>} : vector<16x16xf32>, vector<16x1xf32>, vector<16x1xf32> -> vector<16x1xf32>
    %20 = vector.broadcast %19 : vector<16x1xf32> to vector<16x16xf32>
    %21 = arith.subf %15, %20 : vector<16x16xf32>
    %22 = arith.mulf %21, %21 : vector<16x16xf32>
    %cst_21 = arith.constant dense<0.000000e+00> : vector<16xf32>
    %23 = vector.multi_reduction <add>, %22, %cst_21 [1] : vector<16x16xf32> to vector<16xf32>
    %24 = vector.shape_cast %23 : vector<16xf32> to vector<16x1xf32>
    %c0_22 = arith.constant 0 : index
    %c0_23 = arith.constant 0 : index
    %25 = vector.load %arg3[%c0_22, %c0_23] : memref<16x16xf32, #tpu.memory_space<vmem>>, vector<16x16xf32>
    %cst_24 = arith.constant dense<0.000000e+00> : vector<16x1xf32>
    %26 = tpu.matmul %25, %24, %cst_24 {dimension_numbers = #tpu.dot_dimension_numbers<[1], [0], [0], [1], [0, 0, 1, 1], [], []>} : vector<16x16xf32>, vector<16x1xf32>, vector<16x1xf32> -> vector<16x1xf32>
    %cst_25 = arith.constant 9.99999974E-6 : f32
    %27 = vector.broadcast %cst_25 : f32 to vector<16x1xf32>
    %28 = arith.addf %26, %27 : vector<16x1xf32>
    %29 = math.rsqrt %28 : vector<16x1xf32>
    %30 = vector.broadcast %29 : vector<16x1xf32> to vector<16x16xf32>
    %31 = arith.mulf %21, %30 : vector<16x16xf32>
    %c1_26 = arith.constant 1 : index
    %c0_27 = arith.constant 0 : index
    %c0_28 = arith.constant 0 : index
    %32 = vector.load %arg4[%c1_26, %c0_27, %c0_28] : memref<3x16x1xf32, #tpu.memory_space<vmem>>, vector<1x16x1xf32>
    %33 = vector.shape_cast %32 : vector<1x16x1xf32> to vector<16x1xf32>
    %34 = vector.broadcast %33 : vector<16x1xf32> to vector<16x16xf32>
    %35 = arith.mulf %31, %34 : vector<16x16xf32>
    %c2_29 = arith.constant 2 : index
    %c0_30 = arith.constant 0 : index
    %c0_31 = arith.constant 0 : index
    %36 = vector.load %arg4[%c2_29, %c0_30, %c0_31] : memref<3x16x1xf32, #tpu.memory_space<vmem>>, vector<1x16x1xf32>
    %37 = vector.shape_cast %36 : vector<1x16x1xf32> to vector<16x1xf32>
    %38 = vector.broadcast %37 : vector<16x1xf32> to vector<16x16xf32>
    %39 = arith.addf %35, %38 : vector<16x16xf32>
    %cst_32 = arith.constant 2.000000e+01 : f32
    %40 = vector.broadcast %cst_32 : f32 to vector<16x16xf32>
    %41 = arith.minimumf %39, %40 : vector<16x16xf32>
    %42 = math.exp %41 : vector<16x16xf32>
    %cst_33 = arith.constant 2.000000e+00 : f32
    %43 = vector.broadcast %cst_33 : f32 to vector<16x16xf32>
    %44 = arith.addf %42, %43 : vector<16x16xf32>
    %45 = arith.mulf %42, %44 : vector<16x16xf32>
    %cst_34 = arith.constant 2.000000e+00 : f32
    %46 = vector.broadcast %cst_34 : f32 to vector<16x16xf32>
    %47 = arith.addf %45, %46 : vector<16x16xf32>
    %48 = arith.divf %45, %47 : vector<16x16xf32>
    %49 = arith.mulf %39, %48 : vector<16x16xf32>
    %c0_35 = arith.constant 0 : index
    %c0_36 = arith.constant 0 : index
    %c0_37 = arith.constant 0 : index
    %50 = vector.load %arg5[%c0_35, %c0_36, %c0_37] : memref<1x16x16xf32, #tpu.memory_space<vmem>>, vector<1x16x16xf32>
    %51 = vector.shape_cast %50 : vector<1x16x16xf32> to vector<16x16xf32>
    %52 = vector.shape_cast %49 : vector<16x16xf32> to vector<1x16x16xf32>
    tpu.vector_store %arg5[%c0_35, %c0_36, %c0_37], %52 {strides = array<i32>} : memref<1x16x16xf32, #tpu.memory_space<vmem>>, vector<1x16x16xf32>,
    return
  }
  func.func @transform_0(%arg0: i32) -> (i32, i32, i32) {
    %c0_i32 = arith.constant 0 : i32
    %c0_i32_0 = arith.constant 0 : i32
    %c0_i32_1 = arith.constant 0 : i32
    return %arg0, %c0_i32, %c0_i32_0 : i32, i32, i32
  }
  func.func @transform_1(%arg0: i32) -> (i32, i32) {
    %c0_i32 = arith.constant 0 : i32
    %c0_i32_0 = arith.constant 0 : i32
    %c0_i32_1 = arith.constant 0 : i32
    return %c0_i32, %c0_i32_0 : i32, i32
  }
  func.func @transform_2(%arg0: i32) -> (i32, i32) {
    %c0_i32 = arith.constant 0 : i32
    %c0_i32_0 = arith.constant 0 : i32
    %c0_i32_1 = arith.constant 0 : i32
    return %c0_i32, %c0_i32_0 : i32, i32
  }
  func.func @transform_3(%arg0: i32) -> (i32, i32, i32) {
    %c0_i32 = arith.constant 0 : i32
    %c0_i32_0 = arith.constant 0 : i32
    %c0_i32_1 = arith.constant 0 : i32
    %c0_i32_2 = arith.constant 0 : i32
    return %c0_i32, %c0_i32_0, %c0_i32_1 : i32, i32, i32
  }
  func.func @transform_4(%arg0: i32) -> (i32, i32, i32) {
    %c0_i32 = arith.constant 0 : i32
    %c0_i32_0 = arith.constant 0 : i32
    %c0_i32_1 = arith.constant 0 : i32
    return %arg0, %c0_i32, %c0_i32_0 : i32, i32, i32
  }
}

</mosaic_0001>

<bundles_post_ra>
// kernel: tpu_custom_call.1
= control target key start
LH: loop header
LB: loop body
LE: loop exit
PB: predicated region body
PF: predicated region fallthrough
CT: control target
= control target key end

     0   :  { %9 = vsyncpa [#allocation4], 0  ;;  %s831_s0 = inlined_call_operand.vmem [shape: f32[2,8,18], index: 0, kind: input, shape index: {}]   ;;  %s832_s1 = inlined_call_operand.vmem [shape: f32[16,24], index: 1, kind: input, shape index: {}]   ;;  %s833_s2 = inlined_call_operand.vmem [shape: f32[16,16], index: 2, kind: input, shape index: {}]   ;;  %s834_s3 = inlined_call_operand.vmem [shape: f32[3,16,1], index: 3, kind: input, shape index: {}]   ;;  %s835_s4 = inlined_call_operand.hbm [shape: f32[2,16,16], index: 4, kind: output, shape index: {}]  }
   0x1   :  { %11 = vsyncpa [#allocation4 + $0x1], 0  ;;  %s699_s15 = smov 0   ;;  %s701_s16 = smov 0  }
   0x2   :  { %s703_s17 = smov 0   ;;  %s705_s18 = smov 0  }
   0x3 LB: > { %s720_s19 = sadd.s32 4294967295, %s667_s18   ;;  %s521_s20 = sadd.s32 4294967294, %s667_s18   ;;  %s667_s18 = sphi %s705_s18, %s841_s18   ;;  %s663_s17 = sphi %s703_s17, %s840_s17   ;;  %s659_s16 = sphi %s701_s16, %s839_s16   ;;  %s655_s15 = sphi %s699_s15, %s838_s15  }
   0x4   : > { %s724_s21 = sadd.s32 1, %s667_s18   ;;  %s113_s22 = sadd.s32 1, %s663_s17 }
   0x5   : > { %s110_s23 = ssub.s32 %s667_s18, %s724_s21  ;;  %p123_p0 = scmp.ne.s32.totalorder %s663_s17, %s659_s16 }
   0x6   : > { %p111_p1 = scmp.eq.s32.totalorder %s110_s23, 0  ;;  %p124_p2 = scmp.eq.s32.totalorder %s720_s19, 1 }
   0x7   : > { %p129_p3 = scmp.ne.s32.totalorder %s659_s16, %s655_s15  ;;  %p130_p4 = scmp.eq.s32.totalorder %s521_s20, 1 }
   0x8   : > { %s735_s24 = scalar_select %p111_p1, %s663_s17, %s113_s22  }
   0x9   : > { %p737_p5 = por %p124_p2, %p123_p0  ;;  %p741_p6 = por %p130_p4, %p129_p3 }
   0xa   : > { %p524_p7 = scmp.ge.s32.totalorder %s667_s18, 1  ;;  %p164_p8 = scmp.lt.s32.totalorder %s667_s18, 3 }
   0xc   : > { %p165_p9 = pnand %p524_p7, %p164_p8 }
   0xd   : > { %p189_p10 = scmp.lt.s32.totalorder (!%p165_p9), %s720_s19, 1  ;;  %s669_s6 = smov (!%p165_p9), 126  }
   0xe   : > { %168 = sbr.rel (%p165_p9) target bundleno = 1118 (0x45e), region = 36  ;;  %s670_s7 = smov (!%p165_p9), 127  }
   0xf   : > { %s186_s11 = sand.u32 (!%p165_p9), 1, %s659_s16   ;;  %s542_s14 = sshll.u32 (!%p165_p9), %s720_s19, 4 }
  0x10   : > { %s525_s12 = sshll.u32 (!%p165_p9), %s186_s11, 4  ;;  %s455_s23 = scalar_lea.hbm (!%p165_p9), %s835_s4, %s542_s14 }
  0x11   : > { %s188_s13 = scalar_lea.vmem (!%p165_p9), [#allocation3], %s525_s12 }
  0x13   : > { %s190_s27 = scalar_select %p189_p10, %s720_s19, 1  ;;  %vm194_vm0 = vcmask 130048   ;;  %v214_v1 = vld [vmem:[%s834_s3 + $0x8] sm:$0xff]  ;;  %v671_v2 = vmov 0   ;;  %v213_v3 = vld [vmem:[%s834_s3] sm:$0xff]  ;;  %vm225_vm1 = vcmask 195584  }
  0x14   : > { %590 = vset.pattern.permute.xlu1 %v671_v2  ;;  %591 = vset.pattern.permute.xlu0 %v671_v2  ;;  %v209_v9 = vld [vmem:[%s832_s1 + $0x8] sm:$0xff]  ;;  %v208_v10 = vld [vmem:[%s832_s1] sm:$0xff]  ;;  %v533_v25 = vld [vmem:[%s834_s3 + $0x10] sm:$0xff]  ;;  %s444_s19 = scalar_lea.sflag [#allocation4], %s186_s11 }
  0x15   : > { %s526_s28 = sshll.u32 %s190_s27, 3  ;;  %222 = vperm.xlu1 %590, %v214_v1   ;;  %592 = vset.pattern.permute.xlu2 %v671_v2  ;;  %v261_v20 = vld [vmem:[%s833_s2] sm:$0xff]  ;;  %v262_v22 = vld [vmem:[%s833_s2 + $0x8] sm:$0xff]  ;;  %v534_v26 = vld [vmem:[%s834_s3 + $0x18] sm:$0xff]  ;;  %s456_s27 = sshll.u32 %s188_s13, 4  ;;  %s457_s27 = int_to_ptr.vmem [resolvable:$true] %s456_s27 }
  0x16   : > { %s192_s5 = scalar_lea.vmem %s831_s0, %s526_s28  ;;  %v535_v54 = vld [vmem:[%s834_s3 + $0x20] sm:$0xff]  ;;  %v536_v56 = vld [vmem:[%s834_s3 + $0x28] sm:$0xff]  ;;  %s458_s28 = sshll.u32 %s455_s23, 4  ;;  %s459_s28 = int_to_ptr.hbm [resolvable:$true] %s458_s28 }
  0x17   : > { %v202_v0 = vld [vmem:[%s192_s5] sm:$0xff]  ;;  %s619_s29 = sshra.s32 %s459_s28, 4  ;;  %s620_s29 = int_to_ptr.hbm [resolvable:$true] %s619_s29 }
  0x18   : > { %204 = vrot.lane.b32.xlu0 %v202_v0, %s669_s6  ;;  %195 = vst.msk [vmem:[#allocation2] sm:$0xff] %vm194_vm0, %v202_v0  ;;  %s621_s30 = scalar_lea.hbm %s620_s29, 16  ;;  %p626_p0 = scmp.lt.s32.totalorder %s620_s29, %s835_s4 }
  0x19   : > { %p622_p11 = scmp.ne.s32.totalorder %s620_s29, %s621_s30 }
  0x1b   : > { %p623_p12 = pnand %p622_p11, %p737_p5 }
  0x1d   : > { %217 = vperm.xlu1 %590, %v213_v3   ;;  %p624_p13 = pneg %p623_p12 }
  0x1f   : > { %v210_v8 = vld [vmem:[#allocation2] sm:$0xff] }
  0x20   : > { %198 = vrot.lane.b32.xlu0 %v202_v0, %s670_s7  ;;  %s625_s7 = scalar_lea.hbm %s835_s4, 32 }
  0x21   : > { %p627_p1 = scmp.lt.s32.totalorder %s625_s7, %s621_s30 }
  0x23   : > { %p628_p2 = por %p627_p1, %p626_p0 }
  0x25   : > { %p629_p3 = pnand %p628_p2, %p624_p13 }
  0x87   : > { %v223_v11 = vpop.permute.xlu1 %222 }
  0x8a   : > { %v205_v4 = vpop.permute.xlu0 %204 }
  0x8b   : > { %207 = vst.msk [vmem:[#allocation2 + $0x10] sm:$0xff] %vm194_vm0, %v205_v4 }
  0x8f   : > { %v218_v15 = vpop.permute.xlu1 %217 }
  0x92   : > { %v199_v5 = vpop.permute.xlu0 %198  ;;  %v212_v6 = vld [vmem:[#allocation2 + $0x10] sm:$0xff] }
  0x93   : > { %201 = vst.msk [vmem:[#allocation2 + $0x8] sm:$0xff] %vm194_vm0, %v199_v5  ;;  %245 = vmatpush.msra.mxu0 %v212_v6  ;;  %543 = vmatpush.msra.mxu3 %v212_v6 }
  0x9a   : > { %v211_v7 = vld [vmem:[#allocation2 + $0x8] sm:$0xff] }
  0x9b   : > { %246 = vmatpush.msra.mxu0 %v211_v7  ;;  %544 = vmatpush.msra.mxu3 %v211_v7 }
  0x9d   : > { %545 = vmatpush.msra.mxu3 %v210_v8  ;;  %247 = vmatpush.msra.mxu0 %v210_v8 }
  0x9e   : > { %528 = vmatmul.msk.f32.vlgmr.msra.gmra.mxu3 %vm225_vm1, %v209_v9  ;;  %527 = vmatmul.msk.f32.vlgmr.msra.gmra.mxu0 %vm225_vm1, %v208_v10 }
 0x11b   : > { %v249_v16 = vpop.f32.mrf.mxu0 }
 0x11c   : > { %v250_v17 = vadd.f32 %v249_v16, %v218_v15 }
 0x11e   : > { %v255_v18 = vsel %vm194_vm0, %v250_v17, 0.0 }
 0x121   : > { %v252_v12 = vpop.f32.mrf.mxu3 }
 0x122   : > { %v253_v13 = vadd.f32 %v252_v12, %v223_v11 }
 0x124   : > { %v258_v14 = vsel %vm194_vm0, %v253_v13, 0.0 }
 0x125   : > { %259 = vadd.xlane.f32.xlu2 %v258_v14 }
 0x12d   : > { %256 = vadd.xlane.f32.xlu2 %v255_v18 }
 0x198   : > { %v260_v19 = vpop.xlane.xlu2 %259 }
 0x199   : > { %283 = vmatpush.msra.mxu1 %v260_v19 }
 0x1a0   : > { %v257_v21 = vpop.xlane.xlu2 %256 }
 0x1a1   : > { %284 = vmatpush.msra.mxu1 %v257_v21 }
 0x1a2   : > { %529 = vmatmul.msk.f32.vlgmr.msra.gmra.mxu1 %vm194_vm0, %v261_v20 }
 0x1aa   : > { %530 = vmatmul.msk.f32.gmra.mxu1 %vm194_vm0, %v262_v22 }
 0x21f   : > { %v286_v23 = vpop.f32.mrf.mxu1 }
 0x220   : > { %294 = vperm.xlu1 %590, %v286_v23  }
 0x227   : > { %v289_v24 = vpop.f32.mrf.mxu1 }
 0x228   : > { %299 = vperm.xlu0 %591, %v289_v24  }
 0x230   : > { %372 = vperm.xlu0 %591, %v533_v25  }
 0x238   : > { %377 = vperm.xlu0 %591, %v534_v26  }
 0x292   : > { %v295_v27 = vpop.permute.xlu1 %294 }
 0x293   : > { %v302_v28 = vsub.f32 %v250_v17, %v295_v27 }
 0x295   : > { %v304_v29 = vmul.f32 %v302_v28, %v302_v28 }
 0x297   : > { %v306_v30 = vsel %vm194_vm0, %v304_v29, 0.0 }
 0x298   : > { %307 = vadd.xlane.f32.xlu1 %v306_v30 }
 0x29a   : > { %v300_v31 = vpop.permute.xlu0 %299 }
 0x29b   : > { %v303_v32 = vsub.f32 %v253_v13, %v300_v31 }
 0x29d   : > { %v305_v33 = vmul.f32 %v303_v32, %v303_v32 }
 0x29f   : > { %v309_v34 = vsel %vm194_vm0, %v305_v33, 0.0 }
 0x2a0   : > { %310 = vadd.xlane.f32.xlu2 %v309_v34 }
 0x2a2   : > { %v373_v59 = vpop.permute.xlu0 %372 }
 0x2aa   : > { %v378_v3 = vpop.permute.xlu0 %377 }
 0x30b   : > { %v308_v36 = vpop.xlane.xlu1 %307 }
 0x313   : > { %v311_v35 = vpop.xlane.xlu2 %310 }
 0x314   : > { %326 = vmatpush.msra.mxu2 %v311_v35 }
 0x316   : > { %327 = vmatpush.msra.mxu2 %v308_v36 }
 0x317   : > { %531 = vmatmul.msk.f32.vlgmr.msra.gmra.mxu2 %vm194_vm0, %v261_v20 }
 0x31f   : > { %532 = vmatmul.msk.f32.gmra.mxu2 %vm194_vm0, %v262_v22 }
 0x39a   : > { %v329_v37 = vpop.f32.mrf.mxu2 }
 0x39b   : > { %v330_v38 = vadd.f32 1e-05, %v329_v37 }
 0x39d   : > { %593 = vrsqrt.f32 %v330_v38  ;;  %vm341_vm3 = vweird.f32 %v330_v38 }
 0x3a2   : > { %v332_v39 = vpop.f32.mrf.mxu2 }
 0x3a3   : > { %v594_v40 = vpop.eup %593  ;;  %v333_v41 = vadd.f32 1e-05, %v332_v39 }
 0x3a4   : > { %v336_v42 = vmul.f32 %v594_v40, %v330_v38  ;;  %vm342_vm2 = vweird.f32 %v594_v40 }
 0x3a5   : > { %595 = vrsqrt.f32 %v333_v41  ;;  %vm343_vm4 = vmor %vm341_vm3, %vm342_vm2  ;;  %vm351_vm6 = vweird.f32 %v333_v41 }
 0x3a6   : > { %v337_v43 = vmul.f32 %v594_v40, %v336_v42 }
 0x3a8   : > { %v338_v44 = vmul.f32 0.5, %v337_v43 }
 0x3aa   : > { %v339_v45 = vsub.f32 1.5, %v338_v44 }
 0x3ab   : > { %v596_v46 = vpop.eup %595 }
 0x3ac   : > { %v346_v47 = vmul.f32 %v596_v46, %v333_v41  ;;  %v340_v48 = vmul.f32 %v594_v40, %v339_v45  ;;  %vm352_vm5 = vweird.f32 %v596_v46 }
 0x3ad   : > { %vm353_vm7 = vmor %vm351_vm6, %vm352_vm5 }
 0x3ae   : > { %v347_v49 = vmul.f32 %v596_v46, %v346_v47  ;;  %v344_v50 = vsel %vm343_vm4, %v594_v40, %v340_v48 }
 0x3af   : > { %357 = vperm.xlu2 %592, %v344_v50  }
 0x3b0   : > { %v348_v51 = vmul.f32 0.5, %v347_v49 }
 0x3b2   : > { %v349_v52 = vsub.f32 1.5, %v348_v51 }
 0x3b4   : > { %v350_v53 = vmul.f32 %v596_v46, %v349_v52 }
 0x3b6   : > { %v354_v55 = vsel %vm353_vm7, %v596_v46, %v350_v53 }
 0x3b7   : > { %362 = vperm.xlu0 %591, %v354_v55   ;;  %387 = vperm.xlu2 %592, %v535_v54  }
 0x3bf   : > { %392 = vperm.xlu0 %591, %v536_v56  }
 0x409   : > { %v358_v57 = vpop.permute.xlu2 %357 }
 0x40a   : > { %v365_v58 = vmul.f32 %v358_v57, %v302_v28 }
 0x40c   : > { %v380_v60 = vmul.f32 %v373_v59, %v365_v58 }
 0x411   : > { %v388_v61 = vpop.permute.xlu2 %387 }
 0x412   : > { %v395_v62 = vadd.f32 %v388_v61, %v380_v60 }
 0x414   : > { %v397_v63 = vmin.f32 %v395_v62, 20.0 }
 0x416   : > { %v399_v0 = vmul.f32 1.442695, %v397_v63 }
 0x418   : > { %597 = vpow2.f32 %v399_v0 }
 0x41e   : > { %v598_v1 = vpop.eup %597 }
 0x41f   : > { %v403_v2 = vadd.f32 2.0, %v598_v1 }
 0x421   : > { %v405_v4 = vmul.f32 %v598_v1, %v403_v2 }
 0x423   : > { %v407_v5 = vadd.f32 2.0, %v405_v4 }
 0x425   : > { %599 = vrcp.f32 %v407_v5  ;;  %v420_v11 = vand.u32 2147483648, %v407_v5  ;;  %v418_v13 = vand.u32 2147483647, %v407_v5  ;;  %vm414_vm9 = vweird.f32 %v407_v5 }
 0x427   : > { %v421_v18 = vor.u32 1.1754944e-38, %v420_v11  ;;  %vm419_vm11 = vcmp.eq.f32.partialorder %v418_v13, 8.507059e+37 }
 0x429   : > { %v363_v6 = vpop.permute.xlu0 %362 }
 0x42a   : > { %v366_v9 = vmul.f32 %v363_v6, %v303_v32 }
 0x42b   : > { %v600_v7 = vpop.eup %599 }
 0x42c   : > { %v410_v8 = vmul.f32 %v600_v7, %v407_v5  ;;  %vm415_vm8 = vweird.f32 %v600_v7  ;;  %v381_v14 = vmul.f32 %v378_v3, %v366_v9 }
 0x42d   : > { %vm416_vm10 = vmor %vm414_vm9, %vm415_vm8 }
 0x42e   : > { %v411_v10 = vsub.f32 1.0, %v410_v8 }
 0x430   : > { %v412_v12 = vmul.f32 %v600_v7, %v411_v10 }
 0x431   : > { %v393_v15 = vpop.permute.xlu0 %392 }
 0x432   : > { %v413_v16 = vadd.f32 %v600_v7, %v412_v12  ;;  %v396_v17 = vadd.f32 %v393_v15, %v381_v14 }
 0x434   : > { %v417_v19 = vsel %vm416_vm10, %v600_v7, %v413_v16  ;;  %v398_v20 = vmin.f32 %v396_v17, 20.0 }
 0x435   : > { %v422_v21 = vsel %vm419_vm11, %v421_v18, %v417_v19 }
 0x436   : > { %v423_v22 = vmul.f32 %v422_v21, %v405_v4  ;;  %v401_v23 = vmul.f32 1.442695, %v398_v20 }
 0x438   : > { %v439_v24 = vmul.f32 %v423_v22, %v395_v62  ;;  %601 = vpow2.f32 %v401_v23 }
 0x43a   : > { %441 = vst.msk [vmem:[%s188_s13] sm:$0xff] %vm194_vm0, %v439_v24 }
 0x43e   : > { %v602_v25 = vpop.eup %601 }
 0x43f   : > { %v404_v26 = vadd.f32 2.0, %v602_v25 }
 0x441   : > { %v406_v27 = vmul.f32 %v602_v25, %v404_v26 }
 0x443   : > { %v408_v28 = vadd.f32 2.0, %v406_v27 }
 0x445   : > { %603 = vrcp.f32 %v408_v28  ;;  %v435_v32 = vand.u32 2147483648, %v408_v28  ;;  %v433_v34 = vand.u32 2147483647, %v408_v28  ;;  %vm429_vm13 = vweird.f32 %v408_v28 }
 0x447   : > { %v436_v36 = vor.u32 1.1754944e-38, %v435_v32  ;;  %vm434_vm15 = vcmp.eq.f32.partialorder %v433_v34, 8.507059e+37 }
 0x44b   : > { %v604_v29 = vpop.eup %603 }
 0x44c   : > { %v425_v30 = vmul.f32 %v604_v29, %v408_v28  ;;  %vm430_vm12 = vweird.f32 %v604_v29 }
 0x44d   : > { %vm431_vm14 = vmor %vm429_vm13, %vm430_vm12 }
 0x44e   : > { %v426_v31 = vsub.f32 1.0, %v425_v30 }
 0x450   : > { %v427_v33 = vmul.f32 %v604_v29, %v426_v31 }
 0x452   : > { %v428_v35 = vadd.f32 %v604_v29, %v427_v33 }
 0x454   : > { %v432_v37 = vsel %vm431_vm14, %v604_v29, %v428_v35 }
 0x455   : > { %v437_v38 = vsel %vm434_vm15, %v436_v36, %v432_v37 }
 0x456   : > { %v438_v39 = vmul.f32 %v437_v38, %v406_v27 }
 0x458   : > { %v440_v40 = vmul.f32 %v438_v39, %v396_v17 }
 0x45a   : > { %442 = vst.msk [vmem:[%s188_s13 + $0x8] sm:$0xff] %vm194_vm0, %v440_v40 }
 0x45b   : > { %632 = shalt.err (!%p629_p3)
}
 0x45c   : > { %s672_s10 = smov 128   ;;  %s673_s11 = smov 8  }
 0x45d   : > { %546 = dma.vmem_to_hbm [thread:$0]  (%p737_p5), %s457_s27, 256, %s459_s28, %s444_s19, %s672_s10, %s672_s10, %s673_s11  }
 0x45e PF: > { %p552_p4 = scmp.ge.s32.totalorder %s667_s18, 2  ;;  %s473_s12 = sand.u32 1, %s655_s15  }
 0x45f   : > { %s474_s13 = scalar_lea.sflag [#allocation4], %s473_s12 }
 0x460   : > { %p549_p7 = pnand %p552_p4, %p741_p6 }
 0x462   : > { %p550_p8 = pneg %p549_p7 }
 0x464   : > { %650 = dma.done.wait (%p550_p8), %s474_s13, 256  }
 0x465   : > { %652 = vsyncadd (%p550_p8), %s474_s13, 4294967040  ;;  %p14_p9 = scmp.ge.s32.totalorder %s724_s21, 4   ;;  %s838_s15 = smov %s659_s16 }
 0x466   : > { %s839_s16 = smov %s663_s17  ;;  %s840_s17 = smov %s735_s24 }
 0x467   : > { %s841_s18 = smov %s724_s21  ;;  %16 = sbr.rel (!%p14_p9) target bundleno = 3 (0x3), region = 73 }
 0x46c   :  { %480 = vsyncpa [#allocation4], 1 }
 0x46d   :  { %482 = vsyncpa [#allocation4 + $0x1], 1 }

</bundles_post_ra>
